<compile_context>
chip_gen: v7x
topology: tpu7x:2x2x1
jax: 0.10.0
libtpu: 0.0.40
codegen_flags: <defaults>
</compile_context>

<pallas_src>
import jax
import jax.numpy as jnp
from jax import lax
from jax.experimental import pallas as pl
from jax.experimental.pallas import tpu as pltpu


# ---------------------------------------------------------------------------
# helpers
# ---------------------------------------------------------------------------
def _round_up(x, m):
    return ((x + m - 1) // m) * m


def _largest_divisor_leq(n, cap):
    """Largest divisor of n that is <= cap (>= 1)."""
    for d in range(min(cap, n), 0, -1):
        if n % d == 0:
            return d
    return 1


def _pick_tt(t, bp, hp, vmem_budget_bytes=8 << 20):
    """Time steps per recurrence grid iteration, sized against a VMEM budget.

    Per grid step the pipeline holds ~2x(in block) + 2x(out block) of shape
    (TT, Bp, Hp) f32 plus the (Hp, Hp) weight and (Bp, Hp) scratch.
    """
    bytes_per_step = 4 * bp * hp          # one (Bp, Hp) f32 slab
    fixed = 4 * hp * hp + bytes_per_step  # weight + carried h
    cap = max(1, (vmem_budget_bytes - fixed) // (4 * bytes_per_step))
    return _largest_divisor_leq(t, int(cap))


# ---------------------------------------------------------------------------
# Pallas kernels
# ---------------------------------------------------------------------------
def _proj_kernel(x_ref, w_ref, b_ref, o_ref):
    """One row-tile of o = x @ w + b (grid axis is parallel)."""
    o_ref[...] = (
        jnp.dot(x_ref[...], w_ref[...], preferred_element_type=jnp.float32)
        + b_ref[...]
    ).astype(o_ref.dtype)


def _projection(x, w, b, *, tm_cap=512):
    """Row-tiled (rows, K) @ (K, N) + (1, N) with a parallel Pallas grid."""
    rows, k_dim = x.shape
    n_dim = w.shape[1]
    tm = _largest_divisor_leq(rows, tm_cap)
    # keep the row tile sublane-friendly when possible
    if tm % 8 != 0 and rows % 8 == 0:
        tm = _largest_divisor_leq(rows // 8, tm_cap // 8) * 8
    return pl.pallas_call(
        _proj_kernel,
        out_shape=jax.ShapeDtypeStruct((rows, n_dim), jnp.float32),
        grid_spec=pltpu.PrefetchScalarGridSpec(
            num_scalar_prefetch=0,
            grid=(rows // tm,),
            in_specs=[
                pl.BlockSpec((tm, k_dim), lambda i: (i, 0)),
                pl.BlockSpec((k_dim, n_dim), lambda i: (0, 0)),
                pl.BlockSpec((1, n_dim), lambda i: (0, 0)),
            ],
            out_specs=pl.BlockSpec((tm, n_dim), lambda i: (i, 0)),
        ),
        compiler_params=pltpu.CompilerParams(
            dimension_semantics=("parallel",),
        ),
    )(x, w, b)


def _rnn_recurrence_kernel(ih_ref, whh_ref, hs_ref, h_ref):
    """TT time steps per grid iteration; hidden state carried in VMEM scratch.

    ih_ref : (TT, Bp, Hp)  pre-activations x_t @ W_ih^T + (b_ih + b_hh)
    whh_ref: (Hp, Hp)      W_hh^T (zero padded)
    hs_ref : (TT, Bp, Hp)  output hidden states
    h_ref  : (Bp, Hp)      carried hidden state (VMEM scratch)
    """
    @pl.when(pl.program_id(0) == 0)
    def _():
        h_ref[...] = jnp.zeros_like(h_ref)

    tt_steps = ih_ref.shape[0]
    whh = whh_ref[...]  # hoist the weight load out of the time loop

    def step(tt, h):
        h_new = jnp.tanh(
            ih_ref[tt]
            + jnp.dot(h, whh, preferred_element_type=jnp.float32)
        )
        hs_ref[tt] = h_new
        return h_new

    # Unrolled (capped) so the scheduler can overlap tanh (EUP) with MXU work.
    h_ref[...] = lax.fori_loop(
        0, tt_steps, step, h_ref[...], unroll=min(tt_steps, 8)
    )


# ---------------------------------------------------------------------------
# forward pass
# ---------------------------------------------------------------------------
def simple_rnn_forward(tokens, params):
    """tokens: (B, T) int32.  Returns logits (B, T, V) float32."""
    emb_table = params["embedding"]          # (V, E)
    w_ih = params["w_ih"]                    # (H, E)
    w_hh = params["w_hh"]                    # (H, H)
    b_ih = params["b_ih"]                    # (H,)
    b_hh = params["b_hh"]                    # (H,)
    w_fc = params["w_fc"]                    # (V, H)
    b_fc = params["b_fc"]                    # (V,)

    B, T = tokens.shape
    V, E = emb_table.shape
    H = w_hh.shape[0]

    Bp = _round_up(B, 8)        # sublane-aligned batch
    Hp = _round_up(H, 128)      # lane-aligned hidden
    Vp = _round_up(V, 128)      # lane-dense output
    TT = _pick_tt(T, Bp, Hp)    # time steps per recurrence grid iteration

    # Embedding gather, directly time-major; pad batch rows with zeros.
    # TODO(synk): the gather itself stays in XLA (pure data-dependent lookup).
    emb_tm = jnp.take(emb_table, tokens.T, axis=0)              # (T, B, E)
    emb_tm = jnp.pad(emb_tm, ((0, 0), (0, Bp - B), (0, 0)))     # (T, Bp, E)
    emb_flat = emb_tm.reshape(T * Bp, E)                        # leading-dim merge

    # Zero-padded, transposed weights / biases.
    wih_t = jnp.pad(w_ih.T, ((0, 0), (0, Hp - H)))              # (E, Hp)
    whh_t = jnp.pad(w_hh.T, ((0, Hp - H), (0, Hp - H)))         # (Hp, Hp)
    bias = jnp.pad(b_ih + b_hh, (0, Hp - H)).reshape(1, Hp)     # (1, Hp)
    wfc_t = jnp.pad(w_fc.T, ((0, Hp - H), (0, Vp - V)))         # (Hp, Vp)
    bfc = jnp.pad(b_fc, (0, Vp - V)).reshape(1, Vp)             # (1, Vp)

    # 1) Hoisted input projection: one big parallel matmul, off the serial path.
    ih_flat = _projection(emb_flat, wih_t, bias)                # (T*Bp, Hp)
    ih_tm = ih_flat.reshape(T, Bp, Hp)

    # 2) Serial recurrence: only h @ W_hh^T + tanh remains per time step.
    hs_tm = pl.pallas_call(
        _rnn_recurrence_kernel,
        out_shape=jax.ShapeDtypeStruct((T, Bp, Hp), jnp.float32),
        grid_spec=pltpu.PrefetchScalarGridSpec(
            num_scalar_prefetch=0,
            grid=(T // TT,),
            in_specs=[
                pl.BlockSpec((TT, Bp, Hp), lambda t: (t, 0, 0)),
                pl.BlockSpec((Hp, Hp), lambda t: (0, 0)),
            ],
            out_specs=pl.BlockSpec((TT, Bp, Hp), lambda t: (t, 0, 0)),
            scratch_shapes=[pltpu.VMEM((Bp, Hp), jnp.float32)],
        ),
        compiler_params=pltpu.CompilerParams(
            dimension_semantics=("arbitrary",),   # sequential carry over time
        ),
    )(ih_tm, whh_t)

    # 3) Hoisted output projection: parallel, lane-dense (Vp = multiple of 128).
    logits_flat = _projection(hs_tm.reshape(T * Bp, Hp), wfc_t, bfc)
    logits_tm = logits_flat.reshape(T, Bp, Vp)

    # Strip padding, return batch-first (B, T, V) like PyTorch batch_first=True.
    return jnp.transpose(logits_tm[:, :B, :V], (1, 0, 2))


# ---------------------------------------------------------------------------
# pure-JAX reference (matches PyTorch SimpleRNNModel.forward)
# ---------------------------------------------------------------------------
def _reference_forward(tokens, params):
    emb = jnp.take(params["embedding"], tokens, axis=0)         # (B, T, E)
    B = emb.shape[0]
    H = params["w_hh"].shape[0]

    def step(h, x_t):
        h_new = jnp.tanh(
            x_t @ params["w_ih"].T + params["b_ih"]
            + h @ params["w_hh"].T + params["b_hh"]
        )
        return h_new, h_new

    h0 = jnp.zeros((B, H), jnp.float32)
    _, hs = jax.lax.scan(step, h0, jnp.transpose(emb, (1, 0, 2)))   # (T, B, H)
    out = jnp.transpose(hs, (1, 0, 2))                              # (B, T, H)
    return out @ params["w_fc"].T + params["b_fc"]                  # (B, T, V)


def _init_params(key, vocab_size, embed_size, hidden_size):
    ks = jax.random.split(key, 7)
    scale = 0.1
    return {
        "embedding": scale * jax.random.normal(ks[0], (vocab_size, embed_size), jnp.float32),
        "w_ih": scale * jax.random.normal(ks[1], (hidden_size, embed_size), jnp.float32),
        "w_hh": scale * jax.random.normal(ks[2], (hidden_size, hidden_size), jnp.float32),
        "b_ih": scale * jax.random.normal(ks[3], (hidden_size,), jnp.float32),
        "b_hh": scale * jax.random.normal(ks[4], (hidden_size,), jnp.float32),
        "w_fc": scale * jax.random.normal(ks[5], (vocab_size, hidden_size), jnp.float32),
        "b_fc": scale * jax.random.normal(ks[6], (vocab_size,), jnp.float32),
    }


if __name__ == "__main__":
    vocab_size, embed_size, hidden_size = 16, 16, 32
    batch, seq = 2, 16

    key = jax.random.PRNGKey(0)
    k_params, k_tok = jax.random.split(key)
    params = _init_params(k_params, vocab_size, embed_size, hidden_size)
    tokens = jax.random.randint(k_tok, (batch, seq), 0, vocab_size, dtype=jnp.int32)

    logits = simple_rnn_forward(tokens, params)
    logits = jax.block_until_ready(logits)

    ref = jax.block_until_ready(_reference_forward(tokens, params))
    assert logits.shape == (batch, seq, vocab_size)
    assert jnp.allclose(logits, ref, atol=2e-2, rtol=2e-2)

    print("KERNEL_OK")
</pallas_src>

<mosaic_0001>
module attributes {stable_mosaic.version = 11 : i64} {
  func.func @_proj_kernel(%arg0: i32, %arg1: memref<128x16xf32, #tpu.memory_space<vmem>>, %arg2: memref<16x128xf32, #tpu.memory_space<vmem>>, %arg3: memref<1x128xf32, #tpu.memory_space<vmem>>, %arg4: memref<128x128xf32, #tpu.memory_space<vmem>>) attributes {dimension_semantics = [#tpu.dimension_semantics<parallel>], iteration_bounds = array<i64: 1>, scalar_prefetch = 0 : i64, scratch_operands = 0 : i64, tpu.core_type = #tpu.core_type<tc>, window_params = [{transform_indices = @transform_0, window_bounds = array<i64: 128, 16>}, {pipeline_mode = #tpu.pipeline_mode<synchronous>, transform_indices = @transform_1, window_bounds = array<i64: 16, 128>}, {pipeline_mode = #tpu.pipeline_mode<synchronous>, transform_indices = @transform_2, window_bounds = array<i64: 1, 128>}, {transform_indices = @transform_3, window_bounds = array<i64: 128, 128>}]} {
    %c0 = arith.constant 0 : index
    %c0_0 = arith.constant 0 : index
    %0 = vector.load %arg1[%c0, %c0_0] : memref<128x16xf32, #tpu.memory_space<vmem>>, vector<128x16xf32>
    %c0_1 = arith.constant 0 : index
    %c0_2 = arith.constant 0 : index
    %1 = vector.load %arg2[%c0_1, %c0_2] : memref<16x128xf32, #tpu.memory_space<vmem>>, vector<16x128xf32>
    %cst = arith.constant dense<0.000000e+00> : vector<128x128xf32>
    %2 = tpu.matmul %0, %1, %cst {dimension_numbers = #tpu.dot_dimension_numbers<[1], [0], [0], [1], [0, 0, 1, 1], [], []>} : vector<128x16xf32>, vector<16x128xf32>, vector<128x128xf32> -> vector<128x128xf32>
    %c0_3 = arith.constant 0 : index
    %c0_4 = arith.constant 0 : index
    %3 = vector.load %arg3[%c0_3, %c0_4] : memref<1x128xf32, #tpu.memory_space<vmem>>, vector<1x128xf32>
    %4 = vector.broadcast %3 : vector<1x128xf32> to vector<128x128xf32>
    %5 = arith.addf %2, %4 : vector<128x128xf32>
    %c0_5 = arith.constant 0 : index
    %c0_6 = arith.constant 0 : index
    %6 = vector.load %arg4[%c0_5, %c0_6] : memref<128x128xf32, #tpu.memory_space<vmem>>, vector<128x128xf32>
    tpu.vector_store %arg4[%c0_5, %c0_6], %5 {strides = array<i32>} : memref<128x128xf32, #tpu.memory_space<vmem>>, vector<128x128xf32>,
    return
  }
  func.func @transform_0(%arg0: i32) -> (i32, i32) {
    %c0_i32 = arith.constant 0 : i32
    %c0_i32_0 = arith.constant 0 : i32
    return %arg0, %c0_i32 : i32, i32
  }
  func.func @transform_1(%arg0: i32) -> (i32, i32) {
    %c0_i32 = arith.constant 0 : i32
    %c0_i32_0 = arith.constant 0 : i32
    %c0_i32_1 = arith.constant 0 : i32
    return %c0_i32, %c0_i32_0 : i32, i32
  }
  func.func @transform_2(%arg0: i32) -> (i32, i32) {
    %c0_i32 = arith.constant 0 : i32
    %c0_i32_0 = arith.constant 0 : i32
    %c0_i32_1 = arith.constant 0 : i32
    return %c0_i32, %c0_i32_0 : i32, i32
  }
  func.func @transform_3(%arg0: i32) -> (i32, i32) {
    %c0_i32 = arith.constant 0 : i32
    %c0_i32_0 = arith.constant 0 : i32
    return %arg0, %c0_i32 : i32, i32
  }
}

</mosaic_0001>

<bundles_post_ra>
// kernel: tpu_custom_call.1
= control target key start
LH: loop header
LB: loop body
LE: loop exit
PB: predicated region body
PF: predicated region fallthrough
CT: control target
= control target key end

     0   :  { %vm40_vm0 = vcmask 130048   ;;  %s470_s0 = inlined_call_operand.vmem [shape: f32[128,16], index: 0, kind: input, shape index: {}]   ;;  %s471_s1 = inlined_call_operand.vmem [shape: f32[16,128], index: 1, kind: input, shape index: {}]   ;;  %s472_s2 = inlined_call_operand.vmem [shape: f32[1,128], index: 2, kind: input, shape index: {}]   ;;  %s473_s3 = inlined_call_operand.hbm [shape: f32[128,128], index: 3, kind: output, shape index: {}]  }
   0x1   :  { %v31_v0 = vld [vmem:[%s471_s1] sm:$0xff]  ;;  %v32_v1 = vld [vmem:[%s471_s1 + $0x8] sm:$0xff]  ;;  %v17_v7 = vld [vmem:[%s470_s0 + $0x10] sm:$0xff] }
   0x2   :  { %v15_v2 = vld [vmem:[%s470_s0] sm:$0xff]  ;;  %v329_v3 = vpack.c.bf16 %v32_v1, %v31_v0  ;;  %v16_v5 = vld [vmem:[%s470_s0 + $0x8] sm:$0xff]  ;;  %v25_v8 = vld [vmem:[%s470_s0 + $0x50] sm:$0xff] }
   0x3   :  { %305 = vmatprep.mubr.msk.f32.mxu0 %vm40_vm0, %v15_v2  ;;  %v23_v4 = vld [vmem:[%s470_s0 + $0x40] sm:$0xff]  ;;  %v24_v6 = vld [vmem:[%s470_s0 + $0x48] sm:$0xff] }
   0x4   :  { %317 = vmatprep.mubr.msk.f32.mxu1 %vm40_vm0, %v23_v4  ;;  %330 = vmatprep.subr.bf16.mxu0 %v329_v3 }
   0x5   :  { %333 = vmatprep.subr.bf16.mxu1 %v329_v3  ;;  %332 = vmatpush3.bf16.msra.mxu0 %v329_v3 }
   0x6   :  { %334 = vmatpush3.bf16.msra.mxu1 %v329_v3 }
   0x7   :  { %8 = vsyncpa [#allocation3], 0  ;;  %v18_v9 = vld [vmem:[%s470_s0 + $0x18] sm:$0xff]  ;;  %v19_v11 = vld [vmem:[%s470_s0 + $0x20] sm:$0xff] }
   0x8   :  { %306 = vmatmul.mubr.msk.f32.vlgmr.msra.gmra.mrb[0].mxu0 %vm40_vm0, %v16_v5  ;;  %v26_v10 = vld [vmem:[%s470_s0 + $0x58] sm:$0xff]  ;;  %v27_v12 = vld [vmem:[%s470_s0 + $0x60] sm:$0xff]  ;;  %v20_v13 = vld [vmem:[%s470_s0 + $0x28] sm:$0xff] }
   0x9   :  { %318 = vmatmul.mubr.msk.f32.vlgmr.msra.gmra.mrb[0].mxu1 %vm40_vm0, %v24_v6  ;;  %308 = vmatprep.mubr.msk.f32.mxu0 %vm40_vm0, %v17_v7  ;;  %v28_v14 = vld [vmem:[%s470_s0 + $0x68] sm:$0xff]  ;;  %v21_v15 = vld [vmem:[%s470_s0 + $0x30] sm:$0xff]  ;;  %v22_v17 = vld [vmem:[%s470_s0 + $0x38] sm:$0xff] }
   0xa   :  { %320 = vmatprep.mubr.msk.f32.mxu1 %vm40_vm0, %v25_v8  ;;  %v29_v16 = vld [vmem:[%s470_s0 + $0x70] sm:$0xff]  ;;  %v30_v18 = vld [vmem:[%s470_s0 + $0x78] sm:$0xff]  ;;  %v266_v19 = vld [vmem:[%s472_s2] ss:$0 sm:$0xff]  ;;  %s362_s0 = smov [#allocation2]  }
   0xb   :  { %s255_s2 = sshll.u32 %s362_s0, 4  ;;  %s256_s2 = int_to_ptr.vmem [resolvable:$true] %s255_s2 }
   0xc   :  { %309 = vmatmul.mubr.msk.f32.gmra.mrb[2].mxu0 %vm40_vm0, %v18_v9  ;;  %s338_s21 = scalar_lea.vmem %s256_s2, 2048  ;;  %p343_p1 = scmp.lt.s32.totalorder %s256_s2, %s256_s2 }
   0xd   :  { %321 = vmatmul.mubr.msk.f32.gmra.mrb[2].mxu1 %vm40_vm0, %v26_v10  ;;  %311 = vmatprep.mubr.msk.f32.mxu0 %vm40_vm0, %v19_v11  ;;  %p339_p0 = scmp.ne.s32.totalorder %s256_s2, %s338_s21  ;;  %p344_p2 = scmp.lt.s32.totalorder %s338_s21, %s338_s21 }
   0xe   :  { %323 = vmatprep.mubr.msk.f32.mxu1 %vm40_vm0, %v27_v12 }
   0xf   :  { %p345_p3 = por %p344_p2, %p343_p1 }
  0x10   :  { %312 = vmatmul.mubr.msk.f32.gmra.mrb[4].mxu0 %vm40_vm0, %v20_v13 }
  0x11   :  { %324 = vmatmul.mubr.msk.f32.gmra.mrb[4].mxu1 %vm40_vm0, %v28_v14  ;;  %314 = vmatprep.mubr.msk.f32.mxu0 %vm40_vm0, %v21_v15  ;;  %p346_p4 = pnand %p345_p3, %p339_p0 }
  0x12   :  { %326 = vmatprep.mubr.msk.f32.mxu1 %vm40_vm0, %v29_v16 }
  0x14   :  { %315 = vmatmul.mubr.msk.f32.gmra.mrb[6].mxu0 %vm40_vm0, %v22_v17 }
  0x15   :  { %327 = vmatmul.mubr.msk.f32.gmra.mrb[6].mxu1 %vm40_vm0, %v30_v18 }
  0xdb   :  { %v307_v20 = vpop.f32.mrb[0].mxu0 }
  0xdc   :  { %v319_v21 = vpop.f32.mrb[0].mxu1  ;;  %v161_v22 = vadd.f32 %v307_v20, %v266_v19  ;;  %v155_v24 = vpop.f32.mrb[1].mxu0 }
  0xdd   :  { %v201_v23 = vadd.f32 %v319_v21, %v266_v19  ;;  %v195_v25 = vpop.f32.mrb[1].mxu1  ;;  %v156_v26 = vadd.f32 %v266_v19, %v155_v24 }
  0xde   :  { %v196_v27 = vadd.f32 %v266_v19, %v195_v25  ;;  %235 = vst [vmem:[#allocation2 + $0x8] sm:$0xff] %v161_v22 }
  0xdf   :  { %243 = vst [vmem:[#allocation2 + $0x48] sm:$0xff] %v201_v23  ;;  %234 = vst [vmem:[#allocation2] sm:$0xff] %v156_v26  ;;  %v310_v28 = vpop.f32.mrb[2].mxu0 }
  0xe0   :  { %242 = vst [vmem:[#allocation2 + $0x40] sm:$0xff] %v196_v27  ;;  %v322_v29 = vpop.f32.mrb[2].mxu1  ;;  %v171_v30 = vadd.f32 %v310_v28, %v266_v19  ;;  %v165_v32 = vpop.f32.mrb[3].mxu0 }
  0xe1   :  { %v211_v31 = vadd.f32 %v322_v29, %v266_v19  ;;  %v205_v33 = vpop.f32.mrb[3].mxu1  ;;  %v166_v34 = vadd.f32 %v266_v19, %v165_v32 }
  0xe2   :  { %v206_v35 = vadd.f32 %v266_v19, %v205_v33  ;;  %237 = vst [vmem:[#allocation2 + $0x18] sm:$0xff] %v171_v30 }
  0xe3   :  { %245 = vst [vmem:[#allocation2 + $0x58] sm:$0xff] %v211_v31  ;;  %236 = vst [vmem:[#allocation2 + $0x10] sm:$0xff] %v166_v34  ;;  %v313_v36 = vpop.f32.mrb[4].mxu0 }
  0xe4   :  { %244 = vst [vmem:[#allocation2 + $0x50] sm:$0xff] %v206_v35  ;;  %v325_v37 = vpop.f32.mrb[4].mxu1  ;;  %v181_v38 = vadd.f32 %v313_v36, %v266_v19  ;;  %v175_v40 = vpop.f32.mrb[5].mxu0 }
  0xe5   :  { %v221_v39 = vadd.f32 %v325_v37, %v266_v19  ;;  %v215_v41 = vpop.f32.mrb[5].mxu1  ;;  %v176_v42 = vadd.f32 %v266_v19, %v175_v40 }
  0xe6   :  { %v216_v43 = vadd.f32 %v266_v19, %v215_v41  ;;  %239 = vst [vmem:[#allocation2 + $0x28] sm:$0xff] %v181_v38 }
  0xe7   :  { %247 = vst [vmem:[#allocation2 + $0x68] sm:$0xff] %v221_v39  ;;  %238 = vst [vmem:[#allocation2 + $0x20] sm:$0xff] %v176_v42  ;;  %v316_v44 = vpop.f32.mrb[6].mxu0 }
  0xe8   :  { %246 = vst [vmem:[#allocation2 + $0x60] sm:$0xff] %v216_v43  ;;  %v328_v45 = vpop.f32.mrb[6].mxu1  ;;  %v191_v46 = vadd.f32 %v316_v44, %v266_v19  ;;  %v185_v48 = vpop.f32.mrb[7].mxu0 }
  0xe9   :  { %v231_v47 = vadd.f32 %v328_v45, %v266_v19  ;;  %v225_v49 = vpop.f32.mrb[7].mxu1  ;;  %v186_v50 = vadd.f32 %v266_v19, %v185_v48 }
  0xea   :  { %v226_v51 = vadd.f32 %v266_v19, %v225_v49  ;;  %241 = vst [vmem:[#allocation2 + $0x38] sm:$0xff] %v191_v46 }
  0xeb   :  { %249 = vst [vmem:[#allocation2 + $0x78] sm:$0xff] %v231_v47  ;;  %240 = vst [vmem:[#allocation2 + $0x30] sm:$0xff] %v186_v50 }
  0xec   :  { %248 = vst [vmem:[#allocation2 + $0x70] sm:$0xff] %v226_v51 }
  0xed   :  { %349 = shalt.err (!%p346_p4)
}
  0xee   :  { %s350_s24 = scalar_lea.hbm %s473_s3, 2048 }
  0xef   :  { %p351_p5 = scmp.ne.s32.totalorder %s473_s3, %s350_s24  ;;  %p354_p6 = scmp.lt.u32.totalorder %s350_s24, %s473_s3 }
  0xf1   :  { %p356_p7 = pnand %p354_p6, %p351_p5 }
  0xf3   :  { %359 = shalt.err (!%p356_p7)
}
  0xf4   :  { %s363_s29 = smov 128   ;;  %s364_s30 = smov 8  }
  0xf5   :  { %261 = dma.vmem_to_hbm [thread:$0]  %s256_s2, 2048, %s473_s3, [#allocation3], %s363_s29, %s363_s29, %s364_s30  }
  0xf6   :  { %360 = dma.done.wait [#allocation3], 2048  }
  0xf7   :  { %361 = vsyncadd [#allocation3], 4294965248 }
  0xf8   :  { %265 = vsyncpa [#allocation3], 1 }

</bundles_post_ra>
